<compile_context>
chip_gen: v5e
topology: v5e:2x2
jax: 0.10.0
libtpu: 0.0.40
codegen_flags: <defaults>
</compile_context>

<pallas_src>
import jax
import jax.numpy as jnp
from jax.experimental import pallas as pl
from jax.experimental.pallas import tpu as pltpu


def _rows_times_a_kernel(x_ref, a_ref, o_ref):
    # x_ref: (tm, V), a_ref: (V, W), o_ref: (tm, W) -- one MXU matmul per step,
    # bf16 (or f32) inputs with f32 accumulation.
    o_ref[...] = jnp.dot(
        x_ref[...], a_ref[...], preferred_element_type=jnp.float32
    ).astype(o_ref.dtype)


def _row_tile(m_rows, target=512, want_multi_step=False):
    """Pick the row-tile size: large (amortize per-grid-step overhead),
    divisible by 8 (sublane rule) unless it equals the full extent, and split
    into >= 2 blocks when asked so v7x's second TensorCore gets work."""
    if m_rows <= 8:
        return m_rows
    tm = min(target, m_rows)
    if want_multi_step and tm >= m_rows:
        tm = ((m_rows + 1) // 2 + 7) // 8 * 8
    if tm != m_rows:
        tm = max(8, (tm // 8) * 8)
    return tm


def nconv(x, A, *, row_tile=512, use_bf16=True):
    """x: (N, C, V, L); A: (V, W) or (N, V, W)  ->  (N, C, W, L)."""
    N, C, V, L = x.shape
    W = A.shape[-1]
    out_dtype = x.dtype

    # bf16 at the boundary (f32 accumulation inside the kernel) halves HBM
    # read traffic on this bandwidth-bound op.  Cast before the transpose so
    # the transpose pass also moves half the bytes.
    if use_bf16 and x.dtype == jnp.float32:
        compute_dtype = jnp.bfloat16
    else:
        compute_dtype = x.dtype
    xc = x.astype(compute_dtype)
    Ac = A.astype(compute_dtype)

    # NCVL -> NCLV: V becomes the contraction dim, W lands on the lanes.
    xt = jnp.transpose(xc, (0, 1, 3, 2))

    if A.ndim == 3:
        # Per-batch adjacency: fold C*L into the row axis, keep N as grid axis.
        M = C * L
        xt = xt.reshape(N, M, V)
        tm = _row_tile(M, row_tile, want_multi_step=(N == 1))
        grid = (N, pl.cdiv(M, tm))
        in_specs = [
            pl.BlockSpec((pl.Squeezed(), tm, V), lambda n, m: (n, m, 0)),
            # A only re-DMAs when n changes (the row axis is innermost).
            pl.BlockSpec((pl.Squeezed(), V, W), lambda n, m: (n, 0, 0)),
        ]
        out_specs = pl.BlockSpec((pl.Squeezed(), tm, W), lambda n, m: (n, m, 0))
        out_shape = jax.ShapeDtypeStruct((N, M, W), out_dtype)
        dim_sem = ("parallel", "parallel")
    else:
        # Shared adjacency: fold N*C*L into one row axis -> plain (M,V)@(V,W).
        M = N * C * L
        xt = xt.reshape(M, V)
        tm = _row_tile(M, row_tile, want_multi_step=True)
        grid = (pl.cdiv(M, tm),)
        in_specs = [
            pl.BlockSpec((tm, V), lambda m: (m, 0)),
            # Grid-invariant: A stays VMEM-resident for the whole call.
            pl.BlockSpec((V, W), lambda m: (0, 0)),
        ]
        out_specs = pl.BlockSpec((tm, W), lambda m: (m, 0))
        out_shape = jax.ShapeDtypeStruct((M, W), out_dtype)
        dim_sem = ("parallel",)

    out = pl.pallas_call(
        _rows_times_a_kernel,
        out_shape=out_shape,
        grid=grid,
        in_specs=in_specs,
        out_specs=out_specs,
        # Blocks are a few MiB at most even for V,W ~ 1k nodes, so the default
        # scoped VMEM (16 MiB v5e / 32 MiB v6e, v7x) comfortably holds the
        # double-buffered working set -- no vmem_limit_bytes override needed.
        # TODO(synk): if a profile shows exposed DMA on x, sweep
        # pipeline_mode=pl.Buffered(3) on the x BlockSpec.
        compiler_params=pltpu.CompilerParams(dimension_semantics=dim_sem),
    )(xt, Ac)

    # (N, C*L, W) -> (N, C, L, W) -> (N, C, W, L)
    return jnp.transpose(out.reshape(N, C, L, W), (0, 1, 3, 2))


if __name__ == "__main__":
    key = jax.random.PRNGKey(0)
    k1, k2, k3 = jax.random.split(key, 3)

    N, C, V, L = 2, 4, 16, 8
    W = V  # adjacency is (nodes x nodes)

    x = jax.random.normal(k1, (N, C, V, L), dtype=jnp.float32)
    A2 = jax.random.normal(k2, (V, W), dtype=jnp.float32)     # shared adjacency
    A3 = jax.random.normal(k3, (N, V, W), dtype=jnp.float32)  # batched adjacency

    # The default path intentionally quantizes inputs to bf16 (f32
    # accumulation), so compare against a reference computed from the same
    # quantized inputs to isolate kernel correctness from that quantization.
    xb = x.astype(jnp.bfloat16).astype(jnp.float32)
    A2b = A2.astype(jnp.bfloat16).astype(jnp.float32)
    A3b = A3.astype(jnp.bfloat16).astype(jnp.float32)

    # shared-A path (bf16 inputs, default)
    out2 = nconv(x, A2)
    jax.block_until_ready(out2)
    ref2 = jnp.einsum('ncvl,vw->ncwl', xb, A2b)
    assert out2.shape == (N, C, W, L)
    assert out2.dtype == x.dtype
    assert jnp.allclose(out2, ref2, atol=2e-3, rtol=2e-3)

    # batched-A path (bf16 inputs, default)
    out3 = nconv(x, A3)
    jax.block_until_ready(out3)
    ref3 = jnp.einsum('ncvl,nvw->ncwl', xb, A3b)
    assert out3.shape == (N, C, W, L)
    assert jnp.allclose(out3, ref3, atol=2e-3, rtol=2e-3)

    # full-precision path, exact f32 reference
    out2f = nconv(x, A2, use_bf16=False)
    out3f = nconv(x, A3, use_bf16=False)
    jax.block_until_ready((out2f, out3f))
    assert jnp.allclose(out2f, jnp.einsum('ncvl,vw->ncwl', x, A2),
                        atol=1e-4, rtol=1e-4)
    assert jnp.allclose(out3f, jnp.einsum('ncvl,nvw->ncwl', x, A3),
                        atol=1e-4, rtol=1e-4)

    print("KERNEL_OK")
</pallas_src>

<mosaic_0001>
module attributes {stable_mosaic.version = 11 : i64} {
  func.func @_rows_times_a_kernel(%arg0: i32, %arg1: memref<32x16xbf16, #tpu.memory_space<vmem>>, %arg2: memref<16x16xbf16, #tpu.memory_space<vmem>>, %arg3: memref<32x16xf32, #tpu.memory_space<vmem>>) attributes {dimension_semantics = [#tpu.dimension_semantics<parallel>], iteration_bounds = array<i64: 2>, scalar_prefetch = 0 : i64, scratch_operands = 0 : i64, tpu.core_type = #tpu.core_type<tc>, window_params = [{transform_indices = @transform_0, window_bounds = array<i64: 32, 16>}, {pipeline_mode = #tpu.pipeline_mode<synchronous>, transform_indices = @transform_1, window_bounds = array<i64: 16, 16>}, {transform_indices = @transform_2, window_bounds = array<i64: 32, 16>}]} {
    %c0 = arith.constant 0 : index
    %c0_0 = arith.constant 0 : index
    %0 = vector.load %arg1[%c0, %c0_0] : memref<32x16xbf16, #tpu.memory_space<vmem>>, vector<32x16xbf16>
    %c0_1 = arith.constant 0 : index
    %c0_2 = arith.constant 0 : index
    %1 = vector.load %arg2[%c0_1, %c0_2] : memref<16x16xbf16, #tpu.memory_space<vmem>>, vector<16x16xbf16>
    %cst = arith.constant dense<0.000000e+00> : vector<32x16xf32>
    %2 = tpu.matmul %0, %1, %cst {dimension_numbers = #tpu.dot_dimension_numbers<[1], [0], [0], [1], [0, 0, 1, 1], [], []>} : vector<32x16xbf16>, vector<16x16xbf16>, vector<32x16xf32> -> vector<32x16xf32>
    %c0_3 = arith.constant 0 : index
    %c0_4 = arith.constant 0 : index
    %3 = vector.load %arg3[%c0_3, %c0_4] : memref<32x16xf32, #tpu.memory_space<vmem>>, vector<32x16xf32>
    tpu.vector_store %arg3[%c0_3, %c0_4], %2 {strides = array<i32>} : memref<32x16xf32, #tpu.memory_space<vmem>>, vector<32x16xf32>,
    return
  }
  func.func @transform_0(%arg0: i32) -> (i32, i32) {
    %c0_i32 = arith.constant 0 : i32
    %c0_i32_0 = arith.constant 0 : i32
    return %arg0, %c0_i32 : i32, i32
  }
  func.func @transform_1(%arg0: i32) -> (i32, i32) {
    %c0_i32 = arith.constant 0 : i32
    %c0_i32_0 = arith.constant 0 : i32
    %c0_i32_1 = arith.constant 0 : i32
    return %c0_i32, %c0_i32_0 : i32, i32
  }
  func.func @transform_2(%arg0: i32) -> (i32, i32) {
    %c0_i32 = arith.constant 0 : i32
    %c0_i32_0 = arith.constant 0 : i32
    return %arg0, %c0_i32 : i32, i32
  }
}

</mosaic_0001>

<bundles_post_ra>
// kernel: tpu_custom_call.1
= control target key start
LH: loop header
LB: loop body
LE: loop exit
PB: predicated region body
PF: predicated region fallthrough
CT: control target
= control target key end

     0   :  { %s316_s9 = smov 0   ;;  %s336_s0 = inlined_call_operand.vmem [shape: bf16[64,16], index: 0, kind: input, shape index: {}]   ;;  %s337_s1 = inlined_call_operand.vmem [shape: bf16[16,16], index: 1, kind: input, shape index: {}]   ;;  %s338_s2 = inlined_call_operand.vmem [shape: f32[64,16], index: 2, kind: output, shape index: {}]  }
   0x1 LB: > { %s256_s10 = sadd.s32 4294967295, %s299_s9   ;;  %p260_p0 = scmp.ge.s32.totalorder %s299_s9, 1  ;;  %s299_s9 = sphi %s316_s9, %s12_s9  }
   0x2   : > { %p113_p1 = scmp.lt.s32.totalorder %s299_s9, 3 }
   0x4   : > { %p114_p2 = pnand %p260_p0, %p113_p1 }
   0x5   : > { %s261_s13 = sshll.u32 (!%p114_p2), %s256_s10, 2 }
   0x6   : > { %117 = sbr.rel (%p114_p2) target bundleno = 151 (0x97), region = 28  ;;  %p136_p3 = scmp.lt.s32.totalorder (!%p114_p2), %s261_s13, 7 }
   0xb   : > { %v283_v0 = vld [vmem:[%s337_s1] sm:$0xff]  ;;  %s340_s13 = smov (!%p136_p3, %s261_s13), 7  ;;  %vm170_vm0 = vcmask 130048  }
   0xc   : > { %184 = vmatpush.bf16.msra.mxu0 %v283_v0  ;;  %284 = vmatpush.bf16.msra.mxu1 %v283_v0  ;;  %s262_s14 = sshll.u32 %s340_s13, 2  ;;  %s264_s18 = sshll.u32 %s340_s13, 3 }
   0xd   : > { %s139_s17 = scalar_lea.vmem %s336_s0, %s262_s14  ;;  %s145_s21 = scalar_lea.vmem %s338_s2, %s264_s18 }
   0xe   : > { %v281_v1 = vld [vmem:[%s139_s17] sm:$0xff]  ;;  %v282_v2 = vld [vmem:[%s139_s17 + $0x8] sm:$0xff] }
   0xf   : > { %277 = vmatmul.msk.bf16.vlgmr.msra.gmra.mxu0 %vm170_vm0, %v281_v1  ;;  %278 = vmatmul.msk.bf16.vlgmr.msra.gmra.mxu1 %vm170_vm0, %v282_v2 }
  0x8c   : > { %v186_v3 = vpop.f32.mrf.mxu0  ;;  %v191_v4 = vpop.f32.mrf.mxu1 }
  0x8d   : > { %196 = vst.msk [vmem:[%s145_s21] sm:$0xff] %vm170_vm0, %v186_v3 }
  0x8e   : > { %198 = vst.msk [vmem:[%s145_s21 + $0x10] sm:$0xff] %vm170_vm0, %v191_v4 }
  0x94   : > { %v188_v5 = vpop.f32.mrf.mxu0  ;;  %v193_v6 = vpop.f32.mrf.mxu1 }
  0x95   : > { %197 = vst.msk [vmem:[%s145_s21 + $0x8] sm:$0xff] %vm170_vm0, %v188_v5 }
  0x96   : > { %199 = vst.msk [vmem:[%s145_s21 + $0x18] sm:$0xff] %vm170_vm0, %v193_v6 }
  0x97 PF: > { %s12_s9 = sadd.s32 1, %s299_s9  }
  0x98   : > { %p9_p4 = scmp.ge.s32.totalorder %s12_s9, 4  }
  0x9a   :  { %11 = sbr.rel (!%p9_p4) target bundleno = 1 (0x1), region = 58 }

</bundles_post_ra>
